<compile_context>
chip_gen: v5e
topology: v5e:2x2
jax: 0.10.0
libtpu: 0.0.40
codegen_flags: <defaults>
</compile_context>

<pallas_src>
import math
from dataclasses import dataclass

import jax
import jax.numpy as jnp
from jax import lax
from jax.experimental import pallas as pl
from jax.experimental.pallas import tpu as pltpu


# ----------------------- synthetic "processors" config -----------------------
@dataclass
class ModelCfg:
    name: str
    which: str        # 'categorical' or 'continuous'
    tgt_len: int
    missing: bool
    threshold: float = 0.5


class ProcCfg:
    def __init__(self, models, use_pri=None):
        self.models = models
        self.use_pri = use_pri
        self.tgt_dim = sum(m.tgt_len for m in models if m.name != use_pri)
        self.miss_dim = sum(1 for m in models if m.missing)


# ------------------------------ fused Pallas kernel ---------------------------
def _dot(a, b):
    return jnp.dot(a, b, preferred_element_type=jnp.float32)


def _decoder_recurrent_kernel(
    # hoisted per-step tensors (time-major)
    gi0_r_ref, gi0_z_ref, gi0_n_ref,   # (T, B, H): layer-0 input gates (incl. b_ih)
    beta_ref,                          # (T, B, H): exp(-relu(decay([mask, lag])))
    gig_ref,                           # (3, B, H): glob part of final-GRU input gates (incl. b_ih)
    seqlen_ref,                        # (B, 1) int32
    h0m_ref,                           # (Lm, B, H) initial hidden of the miss_rnn stack
    h0f_ref,                           # (B, H)     initial hidden of the final rnn
    # gate-stacked, pre-transposed weights
    wih_m_ref,                         # (Lm, 3, H, H)  (layer-0 entries unused: hoisted)
    bih_m_ref,                         # (Lm, 3, 1, H)
    whh_m_ref,                         # (Lm, 3, H, H)
    bhh_m_ref,                         # (Lm, 3, 1, H)
    wfh_ref,                           # (3, H, H): final-GRU w_ih columns acting on beta*out
    whh_f_ref,                         # (3, H, H)
    bhh_f_ref,                         # (3, 1, H)
    wtm_ref,                           # (H, 1+Dm): [time_fc | miss_fc] fused head
    btm_ref,                           # (1, 1+Dm)
    wdyn_ref,                          # (H, Dd)
    bdyn_ref,                          # (1, Dd)
    # outputs
    tm_ref,                            # (T, B, 1+Dm): sigmoid(time), sigmoid(miss)
    dyn_ref,                           # (T, B, Dd):   dynamics_fc(out1) (pre-activation)
    # scratch
    hm_scr,                            # (Lm, B, H)
    hf_scr,                            # (B, H)
):
    T = gi0_r_ref.shape[0]
    Lm = h0m_ref.shape[0]

    hm_scr[...] = h0m_ref[...]
    hf_scr[...] = h0f_ref[...]
    seqlen = seqlen_ref[...]           # (B, 1) int32

    def gru_cell(h_prev, gi, whh, bhh, valid):
        # PyTorch GRU cell (gate order r, z, n; b_hh inside the r* term).
        r = jax.nn.sigmoid(gi[0] + _dot(h_prev, whh[0]) + bhh[0])
        z = jax.nn.sigmoid(gi[1] + _dot(h_prev, whh[1]) + bhh[1])
        n = jnp.tanh(gi[2] + r * (_dot(h_prev, whh[2]) + bhh[2]))
        h_new = (1.0 - z) * n + z * h_prev
        # freeze the hidden state past seq_len (packed-sequence semantics)
        return valid * h_new + (1.0 - valid) * h_prev

    def step(t, carry):
        valid = jnp.where(t < seqlen, 1.0, 0.0)          # (B, 1)

        # ---- stacked miss_rnn GRU layers (layer 0 uses the hoisted gates) ----
        gi = (gi0_r_ref[t], gi0_z_ref[t], gi0_n_ref[t])
        x_l = None
        for l in range(Lm):
            if l > 0:
                gi = tuple(_dot(x_l, wih_m_ref[l, g]) + bih_m_ref[l, g]
                           for g in range(3))
            h_new = gru_cell(hm_scr[l], gi,
                             tuple(whh_m_ref[l, g] for g in range(3)),
                             tuple(bhh_m_ref[l, g] for g in range(3)), valid)
            hm_scr[l] = h_new
            x_l = h_new
        out_t = valid * x_l                               # zero-padded past seq_len

        # ---- fused time/miss heads on the miss_rnn output ----
        tm_ref[t] = jax.nn.sigmoid(_dot(out_t, wtm_ref[...]) + btm_ref[...])

        # ---- decay gate + final GRU ----
        yb = beta_ref[t] * out_t
        gi_f = tuple(_dot(yb, wfh_ref[g]) + gig_ref[g] for g in range(3))
        hf_new = gru_cell(hf_scr[...], gi_f,
                          tuple(whh_f_ref[g] for g in range(3)),
                          tuple(bhh_f_ref[g] for g in range(3)), valid)
        hf_scr[...] = hf_new
        out1_t = valid * hf_new

        # ---- dynamics head (segment activations applied outside the kernel) ----
        dyn_ref[t] = _dot(out1_t, wdyn_ref[...]) + bdyn_ref[...]
        return carry

    lax.fori_loop(0, T, step, 0)


def run_decoder_recurrent(gi0_r, gi0_z, gi0_n, beta, gig, seqlen, h0m, h0f,
                          wih_m, bih_m, whh_m, bhh_m, wfh, whh_f, bhh_f,
                          wtm, btm, wdyn, bdyn):
    T, B, H = gi0_r.shape
    Lm = h0m.shape[0]
    n_tm = wtm.shape[1]
    n_dyn = wdyn.shape[1]
    return pl.pallas_call(
        _decoder_recurrent_kernel,
        out_shape=(jax.ShapeDtypeStruct((T, B, n_tm), jnp.float32),
                   jax.ShapeDtypeStruct((T, B, n_dyn), jnp.float32)),
        scratch_shapes=[pltpu.VMEM((Lm, B, H), jnp.float32),
                        pltpu.VMEM((B, H), jnp.float32)],
    )(gi0_r, gi0_z, gi0_n, beta, gig, seqlen, h0m, h0f,
      wih_m, bih_m, whh_m, bhh_m, wfh, whh_f, bhh_f, wtm, btm, wdyn, bdyn)


# ------------------------------- JAX glue -------------------------------------
def make_apply_activation(proc):
    """Segment-wise softmax/sigmoid; segments are 1-4 lanes wide, so plain XLA
    (fuses into the surrounding matmul) instead of a dedicated Pallas call."""
    segs = []
    st = 0
    for m in proc.models:
        if m.name == proc.use_pri:
            continue
        ed = st + m.tgt_len
        if m.which == 'categorical':
            if (not m.missing) or proc.use_pri:
                segs.append(('softmax', st, ed))
            else:
                segs.append(('softmax', st, ed - 1))
                segs.append(('sigmoid', ed - 1, ed))
        else:
            segs.append(('sigmoid', st, ed))
        st = ed
    assert st == proc.tgt_dim

    def apply(x):
        outs = []
        for kind, s, e in segs:
            seg = x[:, s:e]
            outs.append(jax.nn.softmax(seg, axis=-1) if kind == 'softmax'
                        else jax.nn.sigmoid(seg))
        return jnp.concatenate(outs, axis=-1)

    return apply


def pad_zero(x):
    return jnp.concatenate([jnp.zeros_like(x[:, :1, :]), x[:, :-1, :]], axis=1)


def time_encoding(times, H):
    # TODO(synk): TimeEncoding class is not given in the source; using the
    # standard sinusoidal encoding (interleaved sin/cos), built as stack+reshape
    # instead of a strided even/odd scatter.
    half = H // 2
    div = jnp.exp(-math.log(10000.0) * jnp.arange(half, dtype=jnp.float32) * 2.0 / H)
    ang = times * div                                    # (B, T, half)
    pe = jnp.stack([jnp.sin(ang), jnp.cos(ang)], axis=-1)
    return pe.reshape(times.shape[:-1] + (H,))


def _split_gates_t(w, H):
    """(3H, Din) PyTorch GRU weight -> (3, Din, H), pre-transposed for x @ W."""
    return jnp.stack([w[g * H:(g + 1) * H].T for g in range(3)], axis=0)


def _split_bias(b, H):
    """(3H,) -> (3, 1, H)."""
    return b.reshape(3, 1, H)


def decoder_forward(params, s_P, d_P, hidden_dim, layers, apply_act_s, apply_act_d,
                    embed, sta, dynamics, lag, mask, priv, times, seq_len):
    B, T, dyn_dim = dynamics.shape
    H = hidden_dim
    Lm = layers - 1

    glob = embed[:, :H]
    hidden = embed[:, H:].reshape(B, layers, H).transpose(1, 0, 2)   # (layers, B, H)
    h0_miss, h0_fin = hidden[:-1], hidden[-1]

    # ---- statics head (tiny; plain XLA) ----
    ps = params['statics_fc']
    gen_sta = apply_act_s(glob @ ps['w'].T + ps['b'])

    # ---- teacher-forcing inputs ----
    pad_dynamics = pad_zero(dynamics)
    pad_mask = pad_zero(mask)
    pad_times = pad_zero(times)
    pad_priv = pad_zero(priv)
    sta_expand = jnp.broadcast_to(sta[:, None, :], (B, T, sta.shape[-1]))
    x_cat = jnp.concatenate([sta_expand, pad_dynamics, pad_priv, pad_mask], axis=-1)

    # ---- hoisted (non-recurrent) batched matmuls; XLA fuses these ----
    pe = params['embed_fc']
    x_emb = x_cat @ pe['w'].T + pe['b'] + time_encoding(pad_times, H)   # dropout p=0

    r0 = params['miss_rnn'][0]
    gi0 = x_emb @ r0['w_ih'].T + r0['b_ih']                  # (B, T, 3H) layer-0 input gates
    gi0_r, gi0_z, gi0_n = jnp.split(gi0, 3, axis=-1)

    pd = params['decay']
    beta = jnp.exp(-jax.nn.relu(
        jnp.concatenate([mask, lag], axis=-1) @ pd['w'].T + pd['b']))   # (B, T, H)

    rf = params['rnn']
    gig = glob @ rf['w_ih'][:, H:].T + rf['b_ih']            # (B, 3H) glob part of gates
    gig = jnp.stack(jnp.split(gig, 3, axis=-1), axis=0)      # (3, B, H)

    # ---- pack weights for the kernel (pre-transposed, gate-stacked) ----
    wih_m = jnp.stack([_split_gates_t(params['miss_rnn'][l]['w_ih'], H) for l in range(Lm)])
    bih_m = jnp.stack([_split_bias(params['miss_rnn'][l]['b_ih'], H) for l in range(Lm)])
    whh_m = jnp.stack([_split_gates_t(params['miss_rnn'][l]['w_hh'], H) for l in range(Lm)])
    bhh_m = jnp.stack([_split_bias(params['miss_rnn'][l]['b_hh'], H) for l in range(Lm)])
    wfh = _split_gates_t(rf['w_ih'][:, :H], H)               # (3, H, H)
    whh_f = _split_gates_t(rf['w_hh'], H)
    bhh_f = _split_bias(rf['b_hh'], H)
    wtm = jnp.concatenate([params['time_fc']['w'], params['miss_fc']['w']], axis=0).T
    btm = jnp.concatenate([params['time_fc']['b'], params['miss_fc']['b']]).reshape(1, -1)
    wdyn = params['dynamics_fc']['w'].T
    bdyn = params['dynamics_fc']['b'].reshape(1, -1)

    tbc = lambda a: jnp.transpose(a, (1, 0, 2))              # (B,T,C) -> (T,B,C)
    tm_sig, dyn_lin = run_decoder_recurrent(
        tbc(gi0_r), tbc(gi0_z), tbc(gi0_n), tbc(beta), gig,
        seq_len.reshape(B, 1).astype(jnp.int32), h0_miss, h0_fin,
        wih_m, bih_m, whh_m, bhh_m, wfh, whh_f, bhh_f, wtm, btm, wdyn, bdyn)

    tm_sig = jnp.transpose(tm_sig, (1, 0, 2))                # (B, T, 1+miss_dim)
    dyn_lin = jnp.transpose(dyn_lin, (1, 0, 2))              # (B, T, dyn_dim)

    gen_times = tm_sig[..., :1] + pad_times
    gen_mask = tm_sig[..., 1:]
    dyn = apply_act_d(dyn_lin.reshape(B * T, dyn_dim)).reshape(B, T, dyn_dim)
    return gen_sta, dyn, gen_mask, gen_times


# --------------------------- deterministic init --------------------------------
def init_linear(key, out_dim, in_dim):
    k1, k2 = jax.random.split(key)
    bound = 1.0 / math.sqrt(in_dim)
    return {'w': jax.random.uniform(k1, (out_dim, in_dim), jnp.float32, -bound, bound),
            'b': jax.random.uniform(k2, (out_dim,), jnp.float32, -bound, bound)}


def init_gru_layer(key, in_dim, hid):
    ks = jax.random.split(key, 4)
    bound = 1.0 / math.sqrt(hid)
    return {'w_ih': jax.random.uniform(ks[0], (3 * hid, in_dim), jnp.float32, -bound, bound),
            'w_hh': jax.random.uniform(ks[1], (3 * hid, hid), jnp.float32, -bound, bound),
            'b_ih': jax.random.uniform(ks[2], (3 * hid,), jnp.float32, -bound, bound),
            'b_hh': jax.random.uniform(ks[3], (3 * hid,), jnp.float32, -bound, bound)}


if __name__ == "__main__":
    B, T, H, LAYERS = 2, 8, 32, 3

    s_P = ProcCfg([ModelCfg('s_cat', 'categorical', 3, False),
                   ModelCfg('s_cont', 'continuous', 2, False)], use_pri=None)
    d_P = ProcCfg([ModelCfg('d_cat', 'categorical', 4, True),
                   ModelCfg('d_cont1', 'continuous', 2, True),
                   ModelCfg('d_cont2', 'continuous', 2, False)], use_pri=None)

    statics_dim, dynamics_dim = s_P.tgt_dim, d_P.tgt_dim          # 5, 8
    miss_dim = d_P.miss_dim                                        # 2
    s_dim = sum(m.tgt_len for m in d_P.models if m.missing)        # 6
    embed_in = dynamics_dim + s_dim + statics_dim + miss_dim       # 21

    key = jax.random.PRNGKey(0)
    kp, kd = jax.random.split(key)
    pks = jax.random.split(kp, 10)
    params = {
        'embed_fc': init_linear(pks[0], H, embed_in),
        'statics_fc': init_linear(pks[1], statics_dim, H),
        'dynamics_fc': init_linear(pks[2], dynamics_dim, H),
        'decay': init_linear(pks[3], H, 2 * miss_dim),
        'miss_fc': init_linear(pks[4], miss_dim, H),
        'time_fc': init_linear(pks[5], 1, H),
        'rnn': init_gru_layer(pks[6], 2 * H, H),
        'miss_rnn': [init_gru_layer(pks[7 + l], H, H) for l in range(LAYERS - 1)],
    }

    dks = jax.random.split(kd, 7)
    embed = jax.random.normal(dks[0], (B, H * (LAYERS + 1)), jnp.float32)
    sta = jax.random.normal(dks[1], (B, statics_dim), jnp.float32)
    dynamics = jax.random.normal(dks[2], (B, T, dynamics_dim), jnp.float32)
    lag = jax.random.uniform(dks[3], (B, T, miss_dim), jnp.float32)
    mask = (jax.random.uniform(dks[4], (B, T, miss_dim)) > 0.5).astype(jnp.float32)
    priv = jax.random.normal(dks[5], (B, T, s_dim), jnp.float32)
    times = jnp.cumsum(jax.random.uniform(dks[6], (B, T, 1), jnp.float32), axis=1)
    seq_len = jnp.full((B,), T, jnp.int32)

    apply_act_s = make_apply_activation(s_P)
    apply_act_d = make_apply_activation(d_P)

    @jax.jit
    def forward(params, embed, sta, dynamics, lag, mask, priv, times, seq_len):
        return decoder_forward(params, s_P, d_P, H, LAYERS, apply_act_s, apply_act_d,
                               embed, sta, dynamics, lag, mask, priv, times, seq_len)

    outs = forward(params, embed, sta, dynamics, lag, mask, priv, times, seq_len)
    jax.block_until_ready(outs)
    gen_sta, dyn, gen_mask, gen_times = outs
    assert gen_sta.shape == (B, statics_dim)
    assert dyn.shape == (B, T, dynamics_dim)
    assert gen_mask.shape == (B, T, miss_dim)
    assert gen_times.shape == (B, T, 1)
    print("KERNEL_OK")
</pallas_src>

<mosaic_0001>
module attributes {stable_mosaic.version = 11 : i64} {
  func.func @_decoder_recurrent_kernel(%arg0: memref<8x2x32xf32, #tpu.memory_space<vmem>>, %arg1: memref<8x2x32xf32, #tpu.memory_space<vmem>>, %arg2: memref<8x2x32xf32, #tpu.memory_space<vmem>>, %arg3: memref<8x2x32xf32, #tpu.memory_space<vmem>>, %arg4: memref<3x2x32xf32, #tpu.memory_space<vmem>>, %arg5: memref<2x1xi32, #tpu.memory_space<vmem>>, %arg6: memref<2x2x32xf32, #tpu.memory_space<vmem>>, %arg7: memref<2x32xf32, #tpu.memory_space<vmem>>, %arg8: memref<2x3x32x32xf32, #tpu.memory_space<vmem>>, %arg9: memref<2x3x1x32xf32, #tpu.memory_space<vmem>>, %arg10: memref<2x3x32x32xf32, #tpu.memory_space<vmem>>, %arg11: memref<2x3x1x32xf32, #tpu.memory_space<vmem>>, %arg12: memref<3x32x32xf32, #tpu.memory_space<vmem>>, %arg13: memref<3x32x32xf32, #tpu.memory_space<vmem>>, %arg14: memref<3x1x32xf32, #tpu.memory_space<vmem>>, %arg15: memref<32x3xf32, #tpu.memory_space<vmem>>, %arg16: memref<1x3xf32, #tpu.memory_space<vmem>>, %arg17: memref<32x8xf32, #tpu.memory_space<vmem>>, %arg18: memref<1x8xf32, #tpu.memory_space<vmem>>, %arg19: memref<8x2x3xf32, #tpu.memory_space<vmem>>, %arg20: memref<8x2x8xf32, #tpu.memory_space<vmem>>, %arg21: memref<2x2x32xf32, #tpu.memory_space<vmem>>, %arg22: memref<2x32xf32, #tpu.memory_space<vmem>>) attributes {dimension_semantics = [], scalar_prefetch = 0 : i64, scratch_operands = 2 : i64, tpu.core_type = #tpu.core_type<tc>} {
    %c0 = arith.constant 0 : index
    %c0_0 = arith.constant 0 : index
    %c0_1 = arith.constant 0 : index
    %0 = vector.load %arg6[%c0, %c0_0, %c0_1] : memref<2x2x32xf32, #tpu.memory_space<vmem>>, vector<2x2x32xf32>
    %c0_2 = arith.constant 0 : index
    %c0_3 = arith.constant 0 : index
    %c0_4 = arith.constant 0 : index
    %1 = vector.load %arg21[%c0_2, %c0_3, %c0_4] : memref<2x2x32xf32, #tpu.memory_space<vmem>>, vector<2x2x32xf32>
    tpu.vector_store %arg21[%c0_2, %c0_3, %c0_4], %0 {strides = array<i32>} : memref<2x2x32xf32, #tpu.memory_space<vmem>>, vector<2x2x32xf32>,
    %c0_5 = arith.constant 0 : index
    %c0_6 = arith.constant 0 : index
    %2 = vector.load %arg7[%c0_5, %c0_6] : memref<2x32xf32, #tpu.memory_space<vmem>>, vector<2x32xf32>
    %c0_7 = arith.constant 0 : index
    %c0_8 = arith.constant 0 : index
    %3 = vector.load %arg22[%c0_7, %c0_8] : memref<2x32xf32, #tpu.memory_space<vmem>>, vector<2x32xf32>
    tpu.vector_store %arg22[%c0_7, %c0_8], %2 {strides = array<i32>} : memref<2x32xf32, #tpu.memory_space<vmem>>, vector<2x32xf32>,
    %c0_9 = arith.constant 0 : index
    %c0_10 = arith.constant 0 : index
    %4 = vector.load %arg5[%c0_9, %c0_10] : memref<2x1xi32, #tpu.memory_space<vmem>>, vector<2x1xi32>
    %c0_i32 = arith.constant 0 : i32
    %c8_i32 = arith.constant 8 : i32
    %5 = arith.addi %c0_i32, %c8_i32 : i32
    %c1_i32 = arith.constant 1 : i32
    scf.for %arg23 = %c0_i32 to %5 step %c1_i32  : i32 {
      %6 = vector.broadcast %arg23 : i32 to vector<2x1xi32>
      %7 = arith.cmpi slt, %6, %4 : vector<2x1xi32>
      %cst = arith.constant 1.000000e+00 : f32
      %cst_12 = arith.constant 0.000000e+00 : f32
      %8 = vector.broadcast %cst : f32 to vector<2x1xf32>
      %9 = vector.broadcast %cst_12 : f32 to vector<2x1xf32>
      %10 = arith.select %7, %8, %9 : vector<2x1xi1>, vector<2x1xf32>
      %11 = arith.index_cast %arg23 : i32 to index
      %c0_13 = arith.constant 0 : index
      %c0_14 = arith.constant 0 : index
      %12 = vector.load %arg0[%11, %c0_13, %c0_14] : memref<8x2x32xf32, #tpu.memory_space<vmem>>, vector<1x2x32xf32>
      %13 = vector.shape_cast %12 : vector<1x2x32xf32> to vector<2x32xf32>
      %14 = arith.index_cast %arg23 : i32 to index
      %c0_15 = arith.constant 0 : index
      %c0_16 = arith.constant 0 : index
      %15 = vector.load %arg1[%14, %c0_15, %c0_16] : memref<8x2x32xf32, #tpu.memory_space<vmem>>, vector<1x2x32xf32>
      %16 = vector.shape_cast %15 : vector<1x2x32xf32> to vector<2x32xf32>
      %17 = arith.index_cast %arg23 : i32 to index
      %c0_17 = arith.constant 0 : index
      %c0_18 = arith.constant 0 : index
      %18 = vector.load %arg2[%17, %c0_17, %c0_18] : memref<8x2x32xf32, #tpu.memory_space<vmem>>, vector<1x2x32xf32>
      %19 = vector.shape_cast %18 : vector<1x2x32xf32> to vector<2x32xf32>
      %c0_19 = arith.constant 0 : index
      %c0_20 = arith.constant 0 : index
      %c0_21 = arith.constant 0 : index
      %20 = vector.load %arg21[%c0_19, %c0_20, %c0_21] : memref<2x2x32xf32, #tpu.memory_space<vmem>>, vector<1x2x32xf32>
      %21 = vector.shape_cast %20 : vector<1x2x32xf32> to vector<2x32xf32>
      %c0_22 = arith.constant 0 : index
      %c0_23 = arith.constant 0 : index
      %c0_24 = arith.constant 0 : index
      %c0_25 = arith.constant 0 : index
      %22 = vector.load %arg10[%c0_22, %c0_23, %c0_24, %c0_25] : memref<2x3x32x32xf32, #tpu.memory_space<vmem>>, vector<1x1x32x32xf32>
      %23 = vector.shape_cast %22 : vector<1x1x32x32xf32> to vector<32x32xf32>
      %c0_26 = arith.constant 0 : index
      %c1 = arith.constant 1 : index
      %c0_27 = arith.constant 0 : index
      %c0_28 = arith.constant 0 : index
      %24 = vector.load %arg10[%c0_26, %c1, %c0_27, %c0_28] : memref<2x3x32x32xf32, #tpu.memory_space<vmem>>, vector<1x1x32x32xf32>
      %25 = vector.shape_cast %24 : vector<1x1x32x32xf32> to vector<32x32xf32>
      %c0_29 = arith.constant 0 : index
      %c2 = arith.constant 2 : index
      %c0_30 = arith.constant 0 : index
      %c0_31 = arith.constant 0 : index
      %26 = vector.load %arg10[%c0_29, %c2, %c0_30, %c0_31] : memref<2x3x32x32xf32, #tpu.memory_space<vmem>>, vector<1x1x32x32xf32>
      %27 = vector.shape_cast %26 : vector<1x1x32x32xf32> to vector<32x32xf32>
      %c0_32 = arith.constant 0 : index
      %c0_33 = arith.constant 0 : index
      %c0_34 = arith.constant 0 : index
      %c0_35 = arith.constant 0 : index
      %28 = vector.load %arg11[%c0_32, %c0_33, %c0_34, %c0_35] : memref<2x3x1x32xf32, #tpu.memory_space<vmem>>, vector<1x1x1x32xf32>
      %29 = vector.shape_cast %28 : vector<1x1x1x32xf32> to vector<1x32xf32>
      %c0_36 = arith.constant 0 : index
      %c1_37 = arith.constant 1 : index
      %c0_38 = arith.constant 0 : index
      %c0_39 = arith.constant 0 : index
      %30 = vector.load %arg11[%c0_36, %c1_37, %c0_38, %c0_39] : memref<2x3x1x32xf32, #tpu.memory_space<vmem>>, vector<1x1x1x32xf32>
      %31 = vector.shape_cast %30 : vector<1x1x1x32xf32> to vector<1x32xf32>
      %c0_40 = arith.constant 0 : index
      %c2_41 = arith.constant 2 : index
      %c0_42 = arith.constant 0 : index
      %c0_43 = arith.constant 0 : index
      %32 = vector.load %arg11[%c0_40, %c2_41, %c0_42, %c0_43] : memref<2x3x1x32xf32, #tpu.memory_space<vmem>>, vector<1x1x1x32xf32>
      %33 = vector.shape_cast %32 : vector<1x1x1x32xf32> to vector<1x32xf32>
      %cst_44 = arith.constant dense<0.000000e+00> : vector<2x32xf32>
      %34 = tpu.matmul %21, %23, %cst_44 {dimension_numbers = #tpu.dot_dimension_numbers<[1], [0], [0], [1], [0, 0, 1, 1], [], []>} : vector<2x32xf32>, vector<32x32xf32>, vector<2x32xf32> -> vector<2x32xf32>
      %35 = arith.addf %13, %34 : vector<2x32xf32>
      %36 = vector.broadcast %29 : vector<1x32xf32> to vector<2x32xf32>
      %37 = arith.addf %35, %36 : vector<2x32xf32>
      %38 = arith.negf %37 : vector<2x32xf32>
      %39 = math.exp %38 : vector<2x32xf32>
      %cst_45 = arith.constant 1.000000e+00 : f32
      %40 = vector.broadcast %cst_45 : f32 to vector<2x32xf32>
      %41 = arith.addf %40, %39 : vector<2x32xf32>
      %42 = arith.divf %40, %41 : vector<2x32xf32>
      %cst_46 = arith.constant dense<0.000000e+00> : vector<2x32xf32>
      %43 = tpu.matmul %21, %25, %cst_46 {dimension_numbers = #tpu.dot_dimension_numbers<[1], [0], [0], [1], [0, 0, 1, 1], [], []>} : vector<2x32xf32>, vector<32x32xf32>, vector<2x32xf32> -> vector<2x32xf32>
      %44 = arith.addf %16, %43 : vector<2x32xf32>
      %45 = vector.broadcast %31 : vector<1x32xf32> to vector<2x32xf32>
      %46 = arith.addf %44, %45 : vector<2x32xf32>
      %47 = arith.negf %46 : vector<2x32xf32>
      %48 = math.exp %47 : vector<2x32xf32>
      %cst_47 = arith.constant 1.000000e+00 : f32
      %49 = vector.broadcast %cst_47 : f32 to vector<2x32xf32>
      %50 = arith.addf %49, %48 : vector<2x32xf32>
      %51 = arith.divf %49, %50 : vector<2x32xf32>
      %cst_48 = arith.constant dense<0.000000e+00> : vector<2x32xf32>
      %52 = tpu.matmul %21, %27, %cst_48 {dimension_numbers = #tpu.dot_dimension_numbers<[1], [0], [0], [1], [0, 0, 1, 1], [], []>} : vector<2x32xf32>, vector<32x32xf32>, vector<2x32xf32> -> vector<2x32xf32>
      %53 = vector.broadcast %33 : vector<1x32xf32> to vector<2x32xf32>
      %54 = arith.addf %52, %53 : vector<2x32xf32>
      %55 = arith.mulf %42, %54 : vector<2x32xf32>
      %56 = arith.addf %19, %55 : vector<2x32xf32>
      %57 = math.tanh %56 : vector<2x32xf32>
      %cst_49 = arith.constant 1.000000e+00 : f32
      %58 = vector.broadcast %cst_49 : f32 to vector<2x32xf32>
      %59 = arith.subf %58, %51 : vector<2x32xf32>
      %60 = arith.mulf %59, %57 : vector<2x32xf32>
      %61 = arith.mulf %51, %21 : vector<2x32xf32>
      %62 = arith.addf %60, %61 : vector<2x32xf32>
      %63 = vector.broadcast %10 : vector<2x1xf32> to vector<2x32xf32>
      %64 = arith.mulf %63, %62 : vector<2x32xf32>
      %cst_50 = arith.constant 1.000000e+00 : f32
      %65 = vector.broadcast %cst_50 : f32 to vector<2x1xf32>
      %66 = arith.subf %65, %10 : vector<2x1xf32>
      %67 = vector.broadcast %66 : vector<2x1xf32> to vector<2x32xf32>
      %68 = arith.mulf %67, %21 : vector<2x32xf32>
      %69 = arith.addf %64, %68 : vector<2x32xf32>
      %c0_51 = arith.constant 0 : index
      %c0_52 = arith.constant 0 : index
      %c0_53 = arith.constant 0 : index
      %70 = vector.load %arg21[%c0_51, %c0_52, %c0_53] : memref<2x2x32xf32, #tpu.memory_space<vmem>>, vector<1x2x32xf32>
      %71 = vector.shape_cast %70 : vector<1x2x32xf32> to vector<2x32xf32>
      %72 = vector.shape_cast %69 : vector<2x32xf32> to vector<1x2x32xf32>
      tpu.vector_store %arg21[%c0_51, %c0_52, %c0_53], %72 {strides = array<i32>} : memref<2x2x32xf32, #tpu.memory_space<vmem>>, vector<1x2x32xf32>,
      %c1_54 = arith.constant 1 : index
      %c0_55 = arith.constant 0 : index
      %c0_56 = arith.constant 0 : index
      %c0_57 = arith.constant 0 : index
      %73 = vector.load %arg8[%c1_54, %c0_55, %c0_56, %c0_57] : memref<2x3x32x32xf32, #tpu.memory_space<vmem>>, vector<1x1x32x32xf32>
      %74 = vector.shape_cast %73 : vector<1x1x32x32xf32> to vector<32x32xf32>
      %cst_58 = arith.constant dense<0.000000e+00> : vector<2x32xf32>
      %75 = tpu.matmul %69, %74, %cst_58 {dimension_numbers = #tpu.dot_dimension_numbers<[1], [0], [0], [1], [0, 0, 1, 1], [], []>} : vector<2x32xf32>, vector<32x32xf32>, vector<2x32xf32> -> vector<2x32xf32>
      %c1_59 = arith.constant 1 : index
      %c0_60 = arith.constant 0 : index
      %c0_61 = arith.constant 0 : index
      %c0_62 = arith.constant 0 : index
      %76 = vector.load %arg9[%c1_59, %c0_60, %c0_61, %c0_62] : memref<2x3x1x32xf32, #tpu.memory_space<vmem>>, vector<1x1x1x32xf32>
      %77 = vector.shape_cast %76 : vector<1x1x1x32xf32> to vector<1x32xf32>
      %78 = vector.broadcast %77 : vector<1x32xf32> to vector<2x32xf32>
      %79 = arith.addf %75, %78 : vector<2x32xf32>
      %c1_63 = arith.constant 1 : index
      %c1_64 = arith.constant 1 : index
      %c0_65 = arith.constant 0 : index
      %c0_66 = arith.constant 0 : index
      %80 = vector.load %arg8[%c1_63, %c1_64, %c0_65, %c0_66] : memref<2x3x32x32xf32, #tpu.memory_space<vmem>>, vector<1x1x32x32xf32>
      %81 = vector.shape_cast %80 : vector<1x1x32x32xf32> to vector<32x32xf32>
      %cst_67 = arith.constant dense<0.000000e+00> : vector<2x32xf32>
      %82 = tpu.matmul %69, %81, %cst_67 {dimension_numbers = #tpu.dot_dimension_numbers<[1], [0], [0], [1], [0, 0, 1, 1], [], []>} : vector<2x32xf32>, vector<32x32xf32>, vector<2x32xf32> -> vector<2x32xf32>
      %c1_68 = arith.constant 1 : index
      %c1_69 = arith.constant 1 : index
      %c0_70 = arith.constant 0 : index
      %c0_71 = arith.constant 0 : index
      %83 = vector.load %arg9[%c1_68, %c1_69, %c0_70, %c0_71] : memref<2x3x1x32xf32, #tpu.memory_space<vmem>>, vector<1x1x1x32xf32>
      %84 = vector.shape_cast %83 : vector<1x1x1x32xf32> to vector<1x32xf32>
      %85 = vector.broadcast %84 : vector<1x32xf32> to vector<2x32xf32>
      %86 = arith.addf %82, %85 : vector<2x32xf32>
      %c1_72 = arith.constant 1 : index
      %c2_73 = arith.constant 2 : index
      %c0_74 = arith.constant 0 : index
      %c0_75 = arith.constant 0 : index
      %87 = vector.load %arg8[%c1_72, %c2_73, %c0_74, %c0_75] : memref<2x3x32x32xf32, #tpu.memory_space<vmem>>, vector<1x1x32x32xf32>
      %88 = vector.shape_cast %87 : vector<1x1x32x32xf32> to vector<32x32xf32>
      %cst_76 = arith.constant dense<0.000000e+00> : vector<2x32xf32>
      %89 = tpu.matmul %69, %88, %cst_76 {dimension_numbers = #tpu.dot_dimension_numbers<[1], [0], [0], [1], [0, 0, 1, 1], [], []>} : vector<2x32xf32>, vector<32x32xf32>, vector<2x32xf32> -> vector<2x32xf32>
      %c1_77 = arith.constant 1 : index
      %c2_78 = arith.constant 2 : index
      %c0_79 = arith.constant 0 : index
      %c0_80 = arith.constant 0 : index
      %90 = vector.load %arg9[%c1_77, %c2_78, %c0_79, %c0_80] : memref<2x3x1x32xf32, #tpu.memory_space<vmem>>, vector<1x1x1x32xf32>
      %91 = vector.shape_cast %90 : vector<1x1x1x32xf32> to vector<1x32xf32>
      %92 = vector.broadcast %91 : vector<1x32xf32> to vector<2x32xf32>
      %93 = arith.addf %89, %92 : vector<2x32xf32>
      %c1_81 = arith.constant 1 : index
      %c0_82 = arith.constant 0 : index
      %c0_83 = arith.constant 0 : index
      %94 = vector.load %arg21[%c1_81, %c0_82, %c0_83] : memref<2x2x32xf32, #tpu.memory_space<vmem>>, vector<1x2x32xf32>
      %95 = vector.shape_cast %94 : vector<1x2x32xf32> to vector<2x32xf32>
      %c1_84 = arith.constant 1 : index
      %c0_85 = arith.constant 0 : index
      %c0_86 = arith.constant 0 : index
      %c0_87 = arith.constant 0 : index
      %96 = vector.load %arg10[%c1_84, %c0_85, %c0_86, %c0_87] : memref<2x3x32x32xf32, #tpu.memory_space<vmem>>, vector<1x1x32x32xf32>
      %97 = vector.shape_cast %96 : vector<1x1x32x32xf32> to vector<32x32xf32>
      %c1_88 = arith.constant 1 : index
      %c1_89 = arith.constant 1 : index
      %c0_90 = arith.constant 0 : index
      %c0_91 = arith.constant 0 : index
      %98 = vector.load %arg10[%c1_88, %c1_89, %c0_90, %c0_91] : memref<2x3x32x32xf32, #tpu.memory_space<vmem>>, vector<1x1x32x32xf32>
      %99 = vector.shape_cast %98 : vector<1x1x32x32xf32> to vector<32x32xf32>
      %c1_92 = arith.constant 1 : index
      %c2_93 = arith.constant 2 : index
      %c0_94 = arith.constant 0 : index
      %c0_95 = arith.constant 0 : index
      %100 = vector.load %arg10[%c1_92, %c2_93, %c0_94, %c0_95] : memref<2x3x32x32xf32, #tpu.memory_space<vmem>>, vector<1x1x32x32xf32>
      %101 = vector.shape_cast %100 : vector<1x1x32x32xf32> to vector<32x32xf32>
      %c1_96 = arith.constant 1 : index
      %c0_97 = arith.constant 0 : index
      %c0_98 = arith.constant 0 : index
      %c0_99 = arith.constant 0 : index
      %102 = vector.load %arg11[%c1_96, %c0_97, %c0_98, %c0_99] : memref<2x3x1x32xf32, #tpu.memory_space<vmem>>, vector<1x1x1x32xf32>
      %103 = vector.shape_cast %102 : vector<1x1x1x32xf32> to vector<1x32xf32>
      %c1_100 = arith.constant 1 : index
      %c1_101 = arith.constant 1 : index
      %c0_102 = arith.constant 0 : index
      %c0_103 = arith.constant 0 : index
      %104 = vector.load %arg11[%c1_100, %c1_101, %c0_102, %c0_103] : memref<2x3x1x32xf32, #tpu.memory_space<vmem>>, vector<1x1x1x32xf32>
      %105 = vector.shape_cast %104 : vector<1x1x1x32xf32> to vector<1x32xf32>
      %c1_104 = arith.constant 1 : index
      %c2_105 = arith.constant 2 : index
      %c0_106 = arith.constant 0 : index
      %c0_107 = arith.constant 0 : index
      %106 = vector.load %arg11[%c1_104, %c2_105, %c0_106, %c0_107] : memref<2x3x1x32xf32, #tpu.memory_space<vmem>>, vector<1x1x1x32xf32>
      %107 = vector.shape_cast %106 : vector<1x1x1x32xf32> to vector<1x32xf32>
      %cst_108 = arith.constant dense<0.000000e+00> : vector<2x32xf32>
      %108 = tpu.matmul %95, %97, %cst_108 {dimension_numbers = #tpu.dot_dimension_numbers<[1], [0], [0], [1], [0, 0, 1, 1], [], []>} : vector<2x32xf32>, vector<32x32xf32>, vector<2x32xf32> -> vector<2x32xf32>
      %109 = arith.addf %79, %108 : vector<2x32xf32>
      %110 = vector.broadcast %103 : vector<1x32xf32> to vector<2x32xf32>
      %111 = arith.addf %109, %110 : vector<2x32xf32>
      %112 = arith.negf %111 : vector<2x32xf32>
      %113 = math.exp %112 : vector<2x32xf32>
      %cst_109 = arith.constant 1.000000e+00 : f32
      %114 = vector.broadcast %cst_109 : f32 to vector<2x32xf32>
      %115 = arith.addf %114, %113 : vector<2x32xf32>
      %116 = arith.divf %114, %115 : vector<2x32xf32>
      %cst_110 = arith.constant dense<0.000000e+00> : vector<2x32xf32>
      %117 = tpu.matmul %95, %99, %cst_110 {dimension_numbers = #tpu.dot_dimension_numbers<[1], [0], [0], [1], [0, 0, 1, 1], [], []>} : vector<2x32xf32>, vector<32x32xf32>, vector<2x32xf32> -> vector<2x32xf32>
      %118 = arith.addf %86, %117 : vector<2x32xf32>
      %119 = vector.broadcast %105 : vector<1x32xf32> to vector<2x32xf32>
      %120 = arith.addf %118, %119 : vector<2x32xf32>
      %121 = arith.negf %120 : vector<2x32xf32>
      %122 = math.exp %121 : vector<2x32xf32>
      %cst_111 = arith.constant 1.000000e+00 : f32
      %123 = vector.broadcast %cst_111 : f32 to vector<2x32xf32>
      %124 = arith.addf %123, %122 : vector<2x32xf32>
      %125 = arith.divf %123, %124 : vector<2x32xf32>
      %cst_112 = arith.constant dense<0.000000e+00> : vector<2x32xf32>
      %126 = tpu.matmul %95, %101, %cst_112 {dimension_numbers = #tpu.dot_dimension_numbers<[1], [0], [0], [1], [0, 0, 1, 1], [], []>} : vector<2x32xf32>, vector<32x32xf32>, vector<2x32xf32> -> vector<2x32xf32>
      %127 = vector.broadcast %107 : vector<1x32xf32> to vector<2x32xf32>
      %128 = arith.addf %126, %127 : vector<2x32xf32>
      %129 = arith.mulf %116, %128 : vector<2x32xf32>
      %130 = arith.addf %93, %129 : vector<2x32xf32>
      %131 = math.tanh %130 : vector<2x32xf32>
      %cst_113 = arith.constant 1.000000e+00 : f32
      %132 = vector.broadcast %cst_113 : f32 to vector<2x32xf32>
      %133 = arith.subf %132, %125 : vector<2x32xf32>
      %134 = arith.mulf %133, %131 : vector<2x32xf32>
      %135 = arith.mulf %125, %95 : vector<2x32xf32>
      %136 = arith.addf %134, %135 : vector<2x32xf32>
      %137 = vector.broadcast %10 : vector<2x1xf32> to vector<2x32xf32>
      %138 = arith.mulf %137, %136 : vector<2x32xf32>
      %cst_114 = arith.constant 1.000000e+00 : f32
      %139 = vector.broadcast %cst_114 : f32 to vector<2x1xf32>
      %140 = arith.subf %139, %10 : vector<2x1xf32>
      %141 = vector.broadcast %140 : vector<2x1xf32> to vector<2x32xf32>
      %142 = arith.mulf %141, %95 : vector<2x32xf32>
      %143 = arith.addf %138, %142 : vector<2x32xf32>
      %c1_115 = arith.constant 1 : index
      %c0_116 = arith.constant 0 : index
      %c0_117 = arith.constant 0 : index
      %144 = vector.load %arg21[%c1_115, %c0_116, %c0_117] : memref<2x2x32xf32, #tpu.memory_space<vmem>>, vector<1x2x32xf32>
      %145 = vector.shape_cast %144 : vector<1x2x32xf32> to vector<2x32xf32>
      %146 = vector.shape_cast %143 : vector<2x32xf32> to vector<1x2x32xf32>
      tpu.vector_store %arg21[%c1_115, %c0_116, %c0_117], %146 {strides = array<i32>} : memref<2x2x32xf32, #tpu.memory_space<vmem>>, vector<1x2x32xf32>,
      %147 = vector.broadcast %10 : vector<2x1xf32> to vector<2x32xf32>
      %148 = arith.mulf %147, %143 : vector<2x32xf32>
      %c0_118 = arith.constant 0 : index
      %c0_119 = arith.constant 0 : index
      %149 = vector.load %arg15[%c0_118, %c0_119] : memref<32x3xf32, #tpu.memory_space<vmem>>, vector<32x3xf32>
      %cst_120 = arith.constant dense<0.000000e+00> : vector<2x3xf32>
      %150 = tpu.matmul %148, %149, %cst_120 {dimension_numbers = #tpu.dot_dimension_numbers<[1], [0], [0], [1], [0, 0, 1, 1], [], []>} : vector<2x32xf32>, vector<32x3xf32>, vector<2x3xf32> -> vector<2x3xf32>
      %c0_121 = arith.constant 0 : index
      %c0_122 = arith.constant 0 : index
      %151 = vector.load %arg16[%c0_121, %c0_122] : memref<1x3xf32, #tpu.memory_space<vmem>>, vector<1x3xf32>
      %152 = vector.broadcast %151 : vector<1x3xf32> to vector<2x3xf32>
      %153 = arith.addf %150, %152 : vector<2x3xf32>
      %154 = arith.negf %153 : vector<2x3xf32>
      %155 = math.exp %154 : vector<2x3xf32>
      %cst_123 = arith.constant 1.000000e+00 : f32
      %156 = vector.broadcast %cst_123 : f32 to vector<2x3xf32>
      %157 = arith.addf %156, %155 : vector<2x3xf32>
      %158 = arith.divf %156, %157 : vector<2x3xf32>
      %159 = arith.index_cast %arg23 : i32 to index
      %c0_124 = arith.constant 0 : index
      %c0_125 = arith.constant 0 : index
      %160 = vector.load %arg19[%159, %c0_124, %c0_125] : memref<8x2x3xf32, #tpu.memory_space<vmem>>, vector<1x2x3xf32>
      %161 = vector.shape_cast %160 : vector<1x2x3xf32> to vector<2x3xf32>
      %162 = vector.shape_cast %158 : vector<2x3xf32> to vector<1x2x3xf32>
      tpu.vector_store %arg19[%159, %c0_124, %c0_125], %162 {strides = array<i32>} : memref<8x2x3xf32, #tpu.memory_space<vmem>>, vector<1x2x3xf32>,
      %163 = arith.index_cast %arg23 : i32 to index
      %c0_126 = arith.constant 0 : index
      %c0_127 = arith.constant 0 : index
      %164 = vector.load %arg3[%163, %c0_126, %c0_127] : memref<8x2x32xf32, #tpu.memory_space<vmem>>, vector<1x2x32xf32>
      %165 = vector.shape_cast %164 : vector<1x2x32xf32> to vector<2x32xf32>
      %166 = arith.mulf %165, %148 : vector<2x32xf32>
      %c0_128 = arith.constant 0 : index
      %c0_129 = arith.constant 0 : index
      %c0_130 = arith.constant 0 : index
      %167 = vector.load %arg12[%c0_128, %c0_129, %c0_130] : memref<3x32x32xf32, #tpu.memory_space<vmem>>, vector<1x32x32xf32>
      %168 = vector.shape_cast %167 : vector<1x32x32xf32> to vector<32x32xf32>
      %cst_131 = arith.constant dense<0.000000e+00> : vector<2x32xf32>
      %169 = tpu.matmul %166, %168, %cst_131 {dimension_numbers = #tpu.dot_dimension_numbers<[1], [0], [0], [1], [0, 0, 1, 1], [], []>} : vector<2x32xf32>, vector<32x32xf32>, vector<2x32xf32> -> vector<2x32xf32>
      %c0_132 = arith.constant 0 : index
      %c0_133 = arith.constant 0 : index
      %c0_134 = arith.constant 0 : index
      %170 = vector.load %arg4[%c0_132, %c0_133, %c0_134] : memref<3x2x32xf32, #tpu.memory_space<vmem>>, vector<1x2x32xf32>
      %171 = vector.shape_cast %170 : vector<1x2x32xf32> to vector<2x32xf32>
      %172 = arith.addf %169, %171 : vector<2x32xf32>
      %c1_135 = arith.constant 1 : index
      %c0_136 = arith.constant 0 : index
      %c0_137 = arith.constant 0 : index
      %173 = vector.load %arg12[%c1_135, %c0_136, %c0_137] : memref<3x32x32xf32, #tpu.memory_space<vmem>>, vector<1x32x32xf32>
      %174 = vector.shape_cast %173 : vector<1x32x32xf32> to vector<32x32xf32>
      %cst_138 = arith.constant dense<0.000000e+00> : vector<2x32xf32>
      %175 = tpu.matmul %166, %174, %cst_138 {dimension_numbers = #tpu.dot_dimension_numbers<[1], [0], [0], [1], [0, 0, 1, 1], [], []>} : vector<2x32xf32>, vector<32x32xf32>, vector<2x32xf32> -> vector<2x32xf32>
      %c1_139 = arith.constant 1 : index
      %c0_140 = arith.constant 0 : index
      %c0_141 = arith.constant 0 : index
      %176 = vector.load %arg4[%c1_139, %c0_140, %c0_141] : memref<3x2x32xf32, #tpu.memory_space<vmem>>, vector<1x2x32xf32>
      %177 = vector.shape_cast %176 : vector<1x2x32xf32> to vector<2x32xf32>
      %178 = arith.addf %175, %177 : vector<2x32xf32>
      %c2_142 = arith.constant 2 : index
      %c0_143 = arith.constant 0 : index
      %c0_144 = arith.constant 0 : index
      %179 = vector.load %arg12[%c2_142, %c0_143, %c0_144] : memref<3x32x32xf32, #tpu.memory_space<vmem>>, vector<1x32x32xf32>
      %180 = vector.shape_cast %179 : vector<1x32x32xf32> to vector<32x32xf32>
      %cst_145 = arith.constant dense<0.000000e+00> : vector<2x32xf32>
      %181 = tpu.matmul %166, %180, %cst_145 {dimension_numbers = #tpu.dot_dimension_numbers<[1], [0], [0], [1], [0, 0, 1, 1], [], []>} : vector<2x32xf32>, vector<32x32xf32>, vector<2x32xf32> -> vector<2x32xf32>
      %c2_146 = arith.constant 2 : index
      %c0_147 = arith.constant 0 : index
      %c0_148 = arith.constant 0 : index
      %182 = vector.load %arg4[%c2_146, %c0_147, %c0_148] : memref<3x2x32xf32, #tpu.memory_space<vmem>>, vector<1x2x32xf32>
      %183 = vector.shape_cast %182 : vector<1x2x32xf32> to vector<2x32xf32>
      %184 = arith.addf %181, %183 : vector<2x32xf32>
      %c0_149 = arith.constant 0 : index
      %c0_150 = arith.constant 0 : index
      %185 = vector.load %arg22[%c0_149, %c0_150] : memref<2x32xf32, #tpu.memory_space<vmem>>, vector<2x32xf32>
      %c0_151 = arith.constant 0 : index
      %c0_152 = arith.constant 0 : index
      %c0_153 = arith.constant 0 : index
      %186 = vector.load %arg13[%c0_151, %c0_152, %c0_153] : memref<3x32x32xf32, #tpu.memory_space<vmem>>, vector<1x32x32xf32>
      %187 = vector.shape_cast %186 : vector<1x32x32xf32> to vector<32x32xf32>
      %c1_154 = arith.constant 1 : index
      %c0_155 = arith.constant 0 : index
      %c0_156 = arith.constant 0 : index
      %188 = vector.load %arg13[%c1_154, %c0_155, %c0_156] : memref<3x32x32xf32, #tpu.memory_space<vmem>>, vector<1x32x32xf32>
      %189 = vector.shape_cast %188 : vector<1x32x32xf32> to vector<32x32xf32>
      %c2_157 = arith.constant 2 : index
      %c0_158 = arith.constant 0 : index
      %c0_159 = arith.constant 0 : index
      %190 = vector.load %arg13[%c2_157, %c0_158, %c0_159] : memref<3x32x32xf32, #tpu.memory_space<vmem>>, vector<1x32x32xf32>
      %191 = vector.shape_cast %190 : vector<1x32x32xf32> to vector<32x32xf32>
      %c0_160 = arith.constant 0 : index
      %c0_161 = arith.constant 0 : index
      %c0_162 = arith.constant 0 : index
      %192 = vector.load %arg14[%c0_160, %c0_161, %c0_162] : memref<3x1x32xf32, #tpu.memory_space<vmem>>, vector<1x1x32xf32>
      %193 = vector.shape_cast %192 : vector<1x1x32xf32> to vector<1x32xf32>
      %c1_163 = arith.constant 1 : index
      %c0_164 = arith.constant 0 : index
      %c0_165 = arith.constant 0 : index
      %194 = vector.load %arg14[%c1_163, %c0_164, %c0_165] : memref<3x1x32xf32, #tpu.memory_space<vmem>>, vector<1x1x32xf32>
      %195 = vector.shape_cast %194 : vector<1x1x32xf32> to vector<1x32xf32>
      %c2_166 = arith.constant 2 : index
      %c0_167 = arith.constant 0 : index
      %c0_168 = arith.constant 0 : index
      %196 = vector.load %arg14[%c2_166, %c0_167, %c0_168] : memref<3x1x32xf32, #tpu.memory_space<vmem>>, vector<1x1x32xf32>
      %197 = vector.shape_cast %196 : vector<1x1x32xf32> to vector<1x32xf32>
      %cst_169 = arith.constant dense<0.000000e+00> : vector<2x32xf32>
      %198 = tpu.matmul %185, %187, %cst_169 {dimension_numbers = #tpu.dot_dimension_numbers<[1], [0], [0], [1], [0, 0, 1, 1], [], []>} : vector<2x32xf32>, vector<32x32xf32>, vector<2x32xf32> -> vector<2x32xf32>
      %199 = arith.addf %172, %198 : vector<2x32xf32>
      %200 = vector.broadcast %193 : vector<1x32xf32> to vector<2x32xf32>
      %201 = arith.addf %199, %200 : vector<2x32xf32>
      %202 = arith.negf %201 : vector<2x32xf32>
      %203 = math.exp %202 : vector<2x32xf32>
      %cst_170 = arith.constant 1.000000e+00 : f32
      %204 = vector.broadcast %cst_170 : f32 to vector<2x32xf32>
      %205 = arith.addf %204, %203 : vector<2x32xf32>
      %206 = arith.divf %204, %205 : vector<2x32xf32>
      %cst_171 = arith.constant dense<0.000000e+00> : vector<2x32xf32>
      %207 = tpu.matmul %185, %189, %cst_171 {dimension_numbers = #tpu.dot_dimension_numbers<[1], [0], [0], [1], [0, 0, 1, 1], [], []>} : vector<2x32xf32>, vector<32x32xf32>, vector<2x32xf32> -> vector<2x32xf32>
      %208 = arith.addf %178, %207 : vector<2x32xf32>
      %209 = vector.broadcast %195 : vector<1x32xf32> to vector<2x32xf32>
      %210 = arith.addf %208, %209 : vector<2x32xf32>
      %211 = arith.negf %210 : vector<2x32xf32>
      %212 = math.exp %211 : vector<2x32xf32>
      %cst_172 = arith.constant 1.000000e+00 : f32
      %213 = vector.broadcast %cst_172 : f32 to vector<2x32xf32>
      %214 = arith.addf %213, %212 : vector<2x32xf32>
      %215 = arith.divf %213, %214 : vector<2x32xf32>
      %cst_173 = arith.constant dense<0.000000e+00> : vector<2x32xf32>
      %216 = tpu.matmul %185, %191, %cst_173 {dimension_numbers = #tpu.dot_dimension_numbers<[1], [0], [0], [1], [0, 0, 1, 1], [], []>} : vector<2x32xf32>, vector<32x32xf32>, vector<2x32xf32> -> vector<2x32xf32>
      %217 = vector.broadcast %197 : vector<1x32xf32> to vector<2x32xf32>
      %218 = arith.addf %216, %217 : vector<2x32xf32>
      %219 = arith.mulf %206, %218 : vector<2x32xf32>
      %220 = arith.addf %184, %219 : vector<2x32xf32>
      %221 = math.tanh %220 : vector<2x32xf32>
      %cst_174 = arith.constant 1.000000e+00 : f32
      %222 = vector.broadcast %cst_174 : f32 to vector<2x32xf32>
      %223 = arith.subf %222, %215 : vector<2x32xf32>
      %224 = arith.mulf %223, %221 : vector<2x32xf32>
      %225 = arith.mulf %215, %185 : vector<2x32xf32>
      %226 = arith.addf %224, %225 : vector<2x32xf32>
      %227 = vector.broadcast %10 : vector<2x1xf32> to vector<2x32xf32>
      %228 = arith.mulf %227, %226 : vector<2x32xf32>
      %cst_175 = arith.constant 1.000000e+00 : f32
      %229 = vector.broadcast %cst_175 : f32 to vector<2x1xf32>
      %230 = arith.subf %229, %10 : vector<2x1xf32>
      %231 = vector.broadcast %230 : vector<2x1xf32> to vector<2x32xf32>
      %232 = arith.mulf %231, %185 : vector<2x32xf32>
      %233 = arith.addf %228, %232 : vector<2x32xf32>
      %c0_176 = arith.constant 0 : index
      %c0_177 = arith.constant 0 : index
      %234 = vector.load %arg22[%c0_176, %c0_177] : memref<2x32xf32, #tpu.memory_space<vmem>>, vector<2x32xf32>
      tpu.vector_store %arg22[%c0_176, %c0_177], %233 {strides = array<i32>} : memref<2x32xf32, #tpu.memory_space<vmem>>, vector<2x32xf32>,
      %235 = vector.broadcast %10 : vector<2x1xf32> to vector<2x32xf32>
      %236 = arith.mulf %235, %233 : vector<2x32xf32>
      %c0_178 = arith.constant 0 : index
      %c0_179 = arith.constant 0 : index
      %237 = vector.load %arg17[%c0_178, %c0_179] : memref<32x8xf32, #tpu.memory_space<vmem>>, vector<32x8xf32>
      %cst_180 = arith.constant dense<0.000000e+00> : vector<2x8xf32>
      %238 = tpu.matmul %236, %237, %cst_180 {dimension_numbers = #tpu.dot_dimension_numbers<[1], [0], [0], [1], [0, 0, 1, 1], [], []>} : vector<2x32xf32>, vector<32x8xf32>, vector<2x8xf32> -> vector<2x8xf32>
      %c0_181 = arith.constant 0 : index
      %c0_182 = arith.constant 0 : index
      %239 = vector.load %arg18[%c0_181, %c0_182] : memref<1x8xf32, #tpu.memory_space<vmem>>, vector<1x8xf32>
      %240 = vector.broadcast %239 : vector<1x8xf32> to vector<2x8xf32>
      %241 = arith.addf %238, %240 : vector<2x8xf32>
      %242 = arith.index_cast %arg23 : i32 to index
      %c0_183 = arith.constant 0 : index
      %c0_184 = arith.constant 0 : index
      %243 = vector.load %arg20[%242, %c0_183, %c0_184] : memref<8x2x8xf32, #tpu.memory_space<vmem>>, vector<1x2x8xf32>
      %244 = vector.shape_cast %243 : vector<1x2x8xf32> to vector<2x8xf32>
      %245 = vector.shape_cast %241 : vector<2x8xf32> to vector<1x2x8xf32>
      tpu.vector_store %arg20[%242, %c0_183, %c0_184], %245 {strides = array<i32>} : memref<8x2x8xf32, #tpu.memory_space<vmem>>, vector<1x2x8xf32>,
    }
    %c8_i32_11 = arith.constant 8 : i32
    return
  }
}

</mosaic_0001>

<bundles_post_ra>
// kernel: forward.1
= control target key start
LH: loop header
LB: loop body
LE: loop exit
PB: predicated region body
PF: predicated region fallthrough
CT: control target
= control target key end

     0   :  { %vm66_vm0 = vcmask 254976   ;;  %s1106_s27 = smov 0   ;;  %s1480_s0 = inlined_call_operand.vmem [shape: f32[8,2,32], index: 0, kind: input, shape index: {}]   ;;  %s1481_s1 = inlined_call_operand.vmem [shape: f32[8,2,32], index: 1, kind: input, shape index: {}]   ;;  %s1482_s2 = inlined_call_operand.vmem [shape: f32[8,2,32], index: 2, kind: input, shape index: {}]   ;;  %s1483_s3 = inlined_call_operand.vmem [shape: f32[8,2,32], index: 3, kind: input, shape index: {}]   ;;  %s1484_s4 = inlined_call_operand.vmem [shape: f32[3,2,32], index: 4, kind: input, shape index: {}]   ;;  %s1485_s5 = inlined_call_operand.vmem [shape: s32[2,1], index: 5, kind: input, shape index: {}]   ;;  %s1486_s6 = inlined_call_operand.vmem [shape: f32[2,2,32], index: 6, kind: input, shape index: {}]   ;;  %s1487_s8 = inlined_call_operand.vmem [shape: f32[2,3,32,32], index: 8, kind: input, shape index: {}]   ;;  %s1488_s9 = inlined_call_operand.vmem [shape: f32[2,3,1,32], index: 9, kind: input, shape index: {}]   ;;  %s1489_s10 = inlined_call_operand.vmem [shape: f32[2,3,32,32], index: 10, kind: input, shape index: {}]   ;;  %s1490_s11 = inlined_call_operand.vmem [shape: f32[2,3,1,32], index: 11, kind: input, shape index: {}]   ;;  %s1491_s12 = inlined_call_operand.vmem [shape: f32[3,32,32], index: 12, kind: input, shape index: {}]   ;;  %s1492_s13 = inlined_call_operand.vmem [shape: f32[3,32,32], index: 13, kind: input, shape index: {}]   ;;  %s1493_s14 = inlined_call_operand.vmem [shape: f32[3,1,32], index: 14, kind: input, shape index: {}]   ;;  %s1494_s15 = inlined_call_operand.vmem [shape: f32[32,3], index: 15, kind: input, shape index: {}]   ;;  %s1495_s16 = inlined_call_operand.vmem [shape: f32[1,3], index: 16, kind: input, shape index: {}]   ;;  %s1496_s17 = inlined_call_operand.vmem [shape: f32[32,8], index: 17, kind: input, shape index: {}]   ;;  %s1497_s18 = inlined_call_operand.vmem [shape: f32[1,8], index: 18, kind: input, shape index: {}]   ;;  %s1498_s19 = inlined_call_operand.vmem [shape: f32[8,2,3], index: 19, kind: output, shape index: {0}]   ;;  %s1499_s20 = inlined_call_operand.vmem [shape: f32[8,2,8], index: 20, kind: output, shape index: {1}]   ;;  %s1500_s7 = inlined_call_operand.vmem [shape: f32[2,32], index: 7, kind: input, shape index: {}]  }
   0x1   :  { %1502 = sst [smem:[#allocation4_spill]] %s1480_s0  ;;  %v64_v0 = vld [vmem:[%s1486_s6] sm:$0x3]  ;;  %v65_v1 = vld [vmem:[%s1486_s6 + $0x2] sm:$0x3] }
   0x2   :  { %1503 = sst [smem:[#allocation5_spill]] %s1481_s1  ;;  %v69_v2 = vld [vmem:[%s1500_s7] sm:$0x3]  ;;  %67 = vst.msk [vmem:[#allocation2] sm:$0x3] %vm66_vm0, %v64_v0 }
   0x3   :  { %1504 = sst [smem:[#allocation6_spill]] %s1482_s2  ;;  %v1102_v3 = vld [vmem:[%s1485_s5] sm:$0x3]  ;;  %68 = vst.msk [vmem:[#allocation2 + $0x2] sm:$0x3] %vm66_vm0, %v65_v1 }
   0x4   :  { %1505 = sst [smem:[#allocation7_spill]] %s1483_s3  ;;  %70 = vst.msk [vmem:[#allocation3] sm:$0x3] %vm66_vm0, %v69_v2 }
   0x5   :  { %1506 = sst [smem:[#allocation8_spill]] %s1484_s4 }
   0x6 LB: > { %v92_v4 = vld [vmem:[%s1489_s10 + $0x18] sm:$0xff]  ;;  %v91_v6 = vld [vmem:[%s1489_s10 + $0x10] sm:$0xff]  ;;  %v90_v8 = vld [vmem:[%s1489_s10 + $0x8] sm:$0xff]  ;;  %v982_v10 = vmov 0   ;;  %v78_v11 = vstv %s980_s27  ;;  %v983_v16 = vmov 0.0   ;;  %vm108_vm2 = vcmask 261120   ;;  %s980_s27 = sphi %s1106_s27, %s77_s27  }
   0x7   : > { %v834_v5 = vld [vmem:[%s1489_s10 + $0x38] sm:$0xff]  ;;  %124 = vmatpush.msra.mxu0 %v92_v4  ;;  %v833_v7 = vld [vmem:[%s1489_s10 + $0x30] sm:$0xff]  ;;  %v832_v9 = vld [vmem:[%s1489_s10 + $0x28] sm:$0xff]  ;;  %925 = vset.pattern.permute.xlu0 %v982_v10  ;;  %vm79_vm1 = vcmp.lt.s32.totalorder %v78_v11, %v1102_v3  ;;  %s1158_s0 = sshll.u32 %s980_s27, 1  ;;  %s1507_s22 = sld [smem:[#allocation4_spill]] }
   0x8   : > { %168 = vmatpush.msra.mxu1 %v834_v5  ;;  %v89_v12 = vld [vmem:[%s1489_s10] sm:$0xff]  ;;  %v838_v13 = vld [vmem:[%s1489_s10 + $0x58] sm:$0xff]  ;;  %v837_v14 = vld [vmem:[%s1489_s10 + $0x50] sm:$0xff]  ;;  %v80_v17 = vsel %vm79_vm1, 1.0, %v983_v16  ;;  %s1508_s25 = sld [smem:[#allocation5_spill]]  ;;  %s77_s27 = sadd.s32 1, %s980_s27  }
   0x9   : > { %125 = vmatpush.msra.mxu0 %v91_v6  ;;  %v831_v15 = vld [vmem:[%s1489_s10 + $0x20] sm:$0xff]  ;;  %215 = vmatpush.msra.mxu2 %v838_v13  ;;  %v836_v19 = vld [vmem:[%s1489_s10 + $0x48] sm:$0xff]  ;;  %v236_v21 = vsub.f32 1.0, %v80_v17  ;;  %v849_v35 = vld [vmem:[%s1487_s8 + $0x78] sm:$0xff]  ;;  %s1509_s4 = sld [smem:[#allocation6_spill]]  ;;  %p74_p0 = scmp.ge.s32.totalorder %s77_s27, 8  }
   0xa   : > { %169 = vmatpush.msra.mxu1 %v833_v7  ;;  %v1143_v18 = vld [vmem:[#allocation2] sm:$0x3]  ;;  %232 = vperm.xlu0 %925, %v80_v17   ;;  %v855_v36 = vld [vmem:[%s1487_s8 + $0x98] sm:$0xff]  ;;  %v848_v42 = vld [vmem:[%s1487_s8 + $0x70] sm:$0xff]  ;;  %s1510_s26 = sld [smem:[#allocation7_spill]] }
   0xb   : > { %126 = vmatpush.msra.mxu0 %v90_v8  ;;  %216 = vmatpush.msra.mxu2 %v837_v14  ;;  %v835_v20 = vld [vmem:[%s1489_s10 + $0x40] sm:$0xff]  ;;  %v861_v37 = vld [vmem:[%s1487_s8 + $0xb8] sm:$0xff]  ;;  %v854_v43 = vld [vmem:[%s1487_s8 + $0x90] sm:$0xff]  ;;  %s1511_s29 = sld [smem:[#allocation8_spill]] }
   0xc   : > { %170 = vmatpush.msra.mxu1 %v832_v9  ;;  %v926_v24 = vld [vmem:[%s1490_s11] ss:$0 sm:$0xff]  ;;  %v927_v25 = vld [vmem:[%s1490_s11 + $0x1] ss:$0 sm:$0xff]  ;;  %270 = vmatpush.msra.mxu3 %v849_v35  ;;  %v867_v41 = vld [vmem:[%s1489_s10 + $0x78] sm:$0xff] }
   0xd   : > { %127 = vmatpush.msra.mxu0 %v89_v12  ;;  %217 = vmatpush.msra.mxu2 %v836_v19  ;;  %s82_s23 = scalar_lea.vmem %s1507_s22, %s1158_s0  ;;  %v860_v44 = vld [vmem:[%s1487_s8 + $0xb0] sm:$0xff]  ;;  %v847_v46 = vld [vmem:[%s1487_s8 + $0x68] sm:$0xff]  ;;  %v846_v50 = vld [vmem:[%s1487_s8 + $0x60] sm:$0xff] }
   0xe   : > { %171 = vmatpush.msra.mxu1 %v831_v15  ;;  %841 = vmatmul.msk.f32.vlgmr.msra.gmra.mxu0 %vm108_vm2, %v1143_v18  ;;  %s84_s3 = scalar_lea.vmem %s1508_s25, %s1158_s0  ;;  %v83_v22 = vld [vmem:[%s82_s23] sm:$0x3]  ;;  %v866_v45 = vld [vmem:[%s1489_s10 + $0x70] sm:$0xff]  ;;  %v853_v47 = vld [vmem:[%s1487_s8 + $0x88] sm:$0xff] }
   0xf   : > { %843 = vmatmul.msk.f32.vlgmr.msra.gmra.mxu1 %vm108_vm2, %v1143_v18  ;;  %218 = vmatpush.msra.mxu2 %v835_v20  ;;  %v85_v23 = vld [vmem:[%s84_s3] sm:$0x3]  ;;  %v859_v48 = vld [vmem:[%s1487_s8 + $0xa8] sm:$0xff]  ;;  %v871_v54 = vld [vmem:[%s1489_s10 + $0x98] sm:$0xff]  ;;  %s86_s5 = scalar_lea.vmem %s1509_s4, %s1158_s0 }
  0x10   : > { %845 = vmatmul.msk.f32.vlgmr.msra.gmra.mxu2 %vm108_vm2, %v1143_v18  ;;  %300 = vmatpush.msrb.mxu0 %v855_v36  ;;  %v865_v49 = vld [vmem:[%s1489_s10 + $0x68] sm:$0xff]  ;;  %v852_v51 = vld [vmem:[%s1487_s8 + $0x80] sm:$0xff]  ;;  %v870_v55 = vld [vmem:[%s1489_s10 + $0x90] sm:$0xff]  ;;  %s540_s6 = scalar_lea.vmem %s1510_s26, %s1158_s0 }
  0x11   : > { %330 = vmatpush.msrb.mxu1 %v861_v37  ;;  %376 = vmatpush.msrb.mxu2 %v867_v41  ;;  %v858_v52 = vld [vmem:[%s1487_s8 + $0xa0] sm:$0xff]  ;;  %v869_v60 = vld [vmem:[%s1489_s10 + $0x88] sm:$0xff]  ;;  %v875_v8 = vld [vmem:[%s1489_s10 + $0xb8] sm:$0xff] }
  0x12   : > { %239 = vperm.xlu0 %925, %v236_v21   ;;  %271 = vmatpush.msra.mxu3 %v848_v42  ;;  %v864_v53 = vld [vmem:[%s1489_s10 + $0x60] sm:$0xff]  ;;  %v874_v9 = vld [vmem:[%s1489_s10 + $0xb0] sm:$0xff]  ;;  %v873_v13 = vld [vmem:[%s1489_s10 + $0xa8] sm:$0xff] }
  0x13   : > { %301 = vmatpush.msrb.mxu0 %v854_v43  ;;  %331 = vmatpush.msrb.mxu1 %v860_v44  ;;  %v1234_v57 = vld [vmem:[#allocation2 + $0x2] sm:$0x3]  ;;  %v87_v15 = vld [vmem:[%s86_s5] sm:$0x3]  ;;  %v929_v41 = vld [vmem:[%s1488_s9 + $0x4] ss:$0 sm:$0xff]  ;;  %s537_s5 = scalar_lea.vmem %s1498_s19, %s1158_s0 }
  0x14   : > { %377 = vmatpush.msrb.mxu2 %v866_v45  ;;  %272 = vmatpush.msra.mxu3 %v847_v46  ;;  %v928_v63 = vld [vmem:[%s1490_s11 + $0x2] ss:$0 sm:$0xff]  ;;  %v931_v37 = vld [vmem:[%s1488_s9 + $0x3] ss:$0 sm:$0xff] }
  0x15   : > { %302 = vmatpush.msrb.mxu0 %v853_v47  ;;  %332 = vmatpush.msrb.mxu1 %v859_v48  ;;  %v868_v0 = vld [vmem:[%s1489_s10 + $0x80] sm:$0xff] }
  0x16   : > { %378 = vmatpush.msrb.mxu2 %v865_v49  ;;  %273 = vmatpush.msra.mxu3 %v846_v50  ;;  %v872_v19 = vld [vmem:[%s1489_s10 + $0xa0] sm:$0xff] }
  0x17   : > { %303 = vmatpush.msrb.mxu0 %v852_v51  ;;  %333 = vmatpush.msrb.mxu1 %v858_v52  ;;  %v933_v47 = vld [vmem:[%s1490_s11 + $0x4] ss:$0 sm:$0xff] }
  0x18   : > { %379 = vmatpush.msrb.mxu2 %v864_v53  ;;  %420 = vmatpush.msrb.mxu3 %v871_v54  ;;  %v490_v54 = vld [vmem:[%s1494_s15 + $0x18] sm:$0xff] }
  0x19   : > { %879 = vmatmul.msk.f32.vlgmr.msrb.gmra.mxu2 %vm108_vm2, %v1234_v57  ;;  %467 = vmatpush.msra.mxu0 %v875_v8  ;;  %v543_v8 = vld [vmem:[%s1491_s12] sm:$0xff] }
  0x1a   : > { %421 = vmatpush.msrb.mxu3 %v870_v55  ;;  %v546_v55 = vld [vmem:[%s1491_s12 + $0x18] sm:$0xff]  ;;  %510 = vmatpush.msra.mxu1 %v490_v54 }
  0x1b   : > { %468 = vmatpush.msra.mxu0 %v874_v9  ;;  %563 = vmatpush.msra.mxu2 %v546_v55  ;;  %v887_v9 = vld [vmem:[%s1491_s12 + $0x20] sm:$0xff] }
  0x1c   : > { %422 = vmatpush.msrb.mxu3 %v869_v60  ;;  %v545_v60 = vld [vmem:[%s1491_s12 + $0x10] sm:$0xff] }
  0x1d   : > { %469 = vmatpush.msra.mxu0 %v873_v13  ;;  %564 = vmatpush.msra.mxu2 %v545_v60 }
  0x1e   : > { %423 = vmatpush.msrb.mxu3 %v868_v0  ;;  %v544_v0 = vld [vmem:[%s1491_s12 + $0x8] sm:$0xff] }
  0x1f   : > { %470 = vmatpush.msra.mxu0 %v872_v19  ;;  %565 = vmatpush.msra.mxu2 %v544_v0  ;;  %v1418_v0 = vld [vmem:[#allocation3] sm:$0x3] }
  0x21   : > { %566 = vmatpush.msra.mxu2 %v543_v8 }
  0x8b   : > { %v129_v26 = vpop.f32.mrf.mxu0 }
  0x8c   : > { %v173_v27 = vpop.f32.mrf.mxu1  ;;  %v132_v28 = vadd.f32 %v129_v26, %v83_v22 }
  0x8d   : > { %v176_v29 = vadd.f32 %v173_v27, %v85_v23 }
  0x8e   : > { %v136_v30 = vadd.f32 %v926_v24, %v132_v28  ;;  %v1271_v24 = vpop.permute.xlu0 %232 }
  0x8f   : > { %v180_v31 = vadd.f32 %v927_v25, %v176_v29 }
  0x90   : > { %v842_v32 = vmul.f32 -1.442695, %v136_v30 }
  0x91   : > { %v844_v33 = vmul.f32 -1.442695, %v180_v31 }
  0x92   : > { %940 = vpow2.f32 %v842_v32 }
  0x93   : > { %942 = vpow2.f32 %v844_v33  ;;  %v220_v4 = vpop.f32.mrf.mxu2 }
  0x94   : > { %v221_v11 = vadd.f32 %v928_v63, %v220_v4  ;;  %v895_v63 = vld [vmem:[%s1491_s12 + $0x50] sm:$0xff]  ;;  %v894_v4 = vld [vmem:[%s1491_s12 + $0x48] sm:$0xff] }
  0x96   : > { %v1274_v32 = vpop.permute.xlu0 %239 }
  0x97   : > { %v242_v35 = vmul.f32 %v1274_v32, %v1143_v18 }
  0x98   : > { %v941_v34 = vpop.eup %940 }
  0x99   : > { %v943_v38 = vpop.eup %942  ;;  %v1183_v39 = vadd.f32 1.0, %v941_v34 }
  0x9a   : > { %v1185_v40 = vadd.f32 1.0, %v943_v38 }
  0x9b   : > { %944 = vrcp.f32 %v1183_v39  ;;  %v152_v2 = vand.u32 2147483648, %v1183_v39  ;;  %v150_v6 = vand.u32 2147483647, %v1183_v39  ;;  %vm146_vm4 = vweird.f32 %v1183_v39 }
  0x9c   : > { %946 = vrcp.f32 %v1185_v40  ;;  %vm190_vm7 = vweird.f32 %v1185_v40  ;;  %v196_v21 = vand.u32 2147483648, %v1185_v40  ;;  %v194_v22 = vand.u32 2147483647, %v1185_v40  ;;  %v381_v38 = vpop.f32.mrf.mxu2 }
  0x9d   : > { %v153_v12 = vor.u32 1.1754944e-38, %v152_v2  ;;  %vm151_vm6 = vcmp.eq.f32.partialorder %v150_v6, 8.507059e+37  ;;  %v487_v2 = vld [vmem:[%s1494_s15] sm:$0xff] }
  0x9e   : > { %v197_v26 = vor.u32 1.1754944e-38, %v196_v21  ;;  %vm195_vm10 = vcmp.eq.f32.partialorder %v194_v22, 8.507059e+37 }
  0xa1   : > { %v945_v56 = vpop.eup %944 }
  0xa2   : > { %v947_v58 = vpop.eup %946  ;;  %v142_v59 = vmul.f32 %v945_v56, %v1183_v39  ;;  %vm147_vm3 = vweird.f32 %v945_v56 }
  0xa3   : > { %v186_v61 = vmul.f32 %v947_v58, %v1185_v40  ;;  %vm148_vm5 = vmor %vm146_vm4, %vm147_vm3  ;;  %vm191_vm8 = vweird.f32 %v947_v58  ;;  %v932_v40 = vld [vmem:[%s1490_s11 + $0x3] ss:$0 sm:$0xff] }
  0xa4   : > { %v143_v62 = vsub.f32 1.0, %v142_v59  ;;  %vm192_vm9 = vmor %vm190_vm7, %vm191_vm8  ;;  %v896_v59 = vld [vmem:[%s1491_s12 + $0x58] sm:$0xff]  ;;  %vm538_vm8 = vcmask 17408  }
  0xa5   : > { %v187_v1 = vsub.f32 1.0, %v186_v61  ;;  %v488_v61 = vld [vmem:[%s1494_s15 + $0x8] sm:$0xff] }
  0xa6   : > { %v144_v5 = vmul.f32 %v945_v56, %v143_v62  ;;  %v889_v62 = vld [vmem:[%s1491_s12 + $0x30] sm:$0xff] }
  0xa7   : > { %v188_v7 = vmul.f32 %v947_v58, %v187_v1  ;;  %v888_v1 = vld [vmem:[%s1491_s12 + $0x28] sm:$0xff] }
  0xa8   : > { %v145_v10 = vadd.f32 %v945_v56, %v144_v5 }
  0xa9   : > { %v189_v17 = vadd.f32 %v947_v58, %v188_v7 }
  0xaa   : > { %v149_v14 = vsel %vm148_vm5, %v945_v56, %v145_v10  ;;  %v489_v56 = vld [vmem:[%s1494_s15 + $0x10] sm:$0xff]  ;;  %v893_v10 = vld [vmem:[%s1491_s12 + $0x40] sm:$0xff] }
  0xab   : > { %v154_v16 = vsel %vm151_vm6, %v153_v12, %v149_v14  ;;  %v193_v25 = vsel %vm192_vm9, %v947_v58, %v189_v17  ;;  %v890_v58 = vld [vmem:[%s1491_s12 + $0x38] sm:$0xff]  ;;  %511 = vmatpush.msra.mxu1 %v489_v56  ;;  %v934_v12 = vld [vmem:[%s1490_s11 + $0x5] ss:$0 sm:$0xff] }
  0xac   : > { %v223_v20 = vmul.f32 %v221_v11, %v154_v16  ;;  %v198_v27 = vsel %vm195_vm10, %v197_v26, %v193_v25  ;;  %v629_v14 = vld [vmem:[%s1492_s13 + $0x18] sm:$0xff]  ;;  %v628_v16 = vld [vmem:[%s1492_s13 + $0x10] sm:$0xff]  ;;  %v900_v25 = vld [vmem:[%s1492_s13 + $0x28] sm:$0xff] }
  0xad   : > { %v226_v28 = vsub.f32 1.0, %v198_v27  ;;  %v228_v31 = vmul.f32 %v198_v27, %v1143_v18  ;;  %512 = vmatpush.msra.mxu1 %v488_v61  ;;  %v930_v27 = vld [vmem:[%s1488_s9 + $0x5] ss:$0 sm:$0xff]  ;;  %v541_v61 = vld [vmem:[%s540_s6] sm:$0x3]  ;;  %s802_s6 = scalar_lea.vmem %s1499_s20, %s1158_s0 }
  0xae   : > { %v224_v23 = vadd.f32 %v223_v20, %v87_v15  ;;  %v902_v15 = vld [vmem:[%s1492_s13 + $0x38] sm:$0xff]  ;;  %v901_v20 = vld [vmem:[%s1492_s13 + $0x30] sm:$0xff] }
  0xaf   : > { %513 = vmatpush.msra.mxu1 %v487_v2  ;;  %704 = vmatpush.msrb.mxu2 %v902_v15 }
  0xb0   : > { %948 = vtanh.f32 %v224_v23  ;;  %v627_v23 = vld [vmem:[%s1492_s13 + $0x8] sm:$0xff] }
  0xb1   : > { %705 = vmatpush.msrb.mxu2 %v901_v20 }
  0xb3   : > { %706 = vmatpush.msrb.mxu2 %v900_v25 }
  0xb6   : > { %v949_v29 = vpop.eup %948 }
  0xb7   : > { %v227_v30 = vmul.f32 %v949_v29, %v226_v28 }
  0xb9   : > { %v229_v33 = vadd.f32 %v228_v31, %v227_v30 }
  0xbb   : > { %v235_v34 = vmul.f32 %v1271_v24, %v229_v33  ;;  %v626_v33 = vld [vmem:[%s1492_s13] sm:$0xff] }
  0xbd   : > { %v243_v36 = vadd.f32 %v242_v35, %v235_v34  ;;  %v899_v34 = vld [vmem:[%s1492_s13 + $0x20] sm:$0xff] }
  0xbe   : > { %707 = vmatpush.msrb.mxu2 %v899_v34 }
  0xbf   : > { %244 = vst.msk [vmem:[#allocation2] sm:$0x3] %vm66_vm0, %v243_v36  ;;  %851 = vmatmul.msk.f32.vlgmr.msra.gmra.mxu3 %vm108_vm2, %v243_v36  ;;  %857 = vmatmul.msk.f32.vlgmr.msrb.gmra.mxu0 %vm108_vm2, %v243_v36 }
  0xc0   : > { %863 = vmatmul.msk.f32.vlgmr.msrb.gmra.mxu1 %vm108_vm2, %v243_v36  ;;  %590 = vmatpush.msra.mxu3 %v890_v58  ;;  %v483_v58 = vmul.f32 %v1234_v57, %v1274_v32 }
  0xc1   : > { %617 = vmatpush.msrb.mxu0 %v896_v59  ;;  %660 = vmatpush.msrb.mxu1 %v629_v14 }
  0xc2   : > { %591 = vmatpush.msra.mxu3 %v889_v62 }
  0xc3   : > { %618 = vmatpush.msrb.mxu0 %v895_v63  ;;  %661 = vmatpush.msrb.mxu1 %v628_v16 }
  0xc4   : > { %592 = vmatpush.msra.mxu3 %v888_v1 }
  0xc5   : > { %619 = vmatpush.msrb.mxu0 %v894_v4  ;;  %662 = vmatpush.msrb.mxu1 %v627_v23 }
  0xc6   : > { %593 = vmatpush.msra.mxu3 %v887_v9  ;;  %v936_v9 = vld [vmem:[%s1493_s14] ss:$0 sm:$0xff] }
  0xc7   : > { %881 = vmatmul.msk.f32.vlgmr.msrb.gmra.mxu3 %vm108_vm2, %v1234_v57  ;;  %883 = vmatmul.msk.f32.vlgmr.msra.gmra.mxu0 %vm108_vm2, %v1234_v57 }
  0xc8   : > { %620 = vmatpush.msrb.mxu0 %v893_v10  ;;  %663 = vmatpush.msrb.mxu1 %v626_v33  ;;  %v773_v33 = vld [vmem:[%s1496_s17 + $0x10] sm:$0xff] }
 0x13c   : > { %v305_v43 = vpop.f32.mrf.mxu0 }
 0x13d   : > { %v306_v45 = vadd.f32 %v929_v41, %v305_v43  ;;  %v335_v28 = vpop.f32.mrf.mxu1 }
 0x142   : > { %v275_v18 = vpop.f32.mrf.mxu3 }
 0x143   : > { %v276_v39 = vadd.f32 %v931_v37, %v275_v18  ;;  %v336_v18 = vadd.f32 %v930_v27, %v335_v28 }
 0x144   : > { %v472_v19 = vpop.f32.mrf.mxu0 }
 0x145   : > { %v384_v42 = vadd.f32 %v381_v38, %v276_v39  ;;  %v473_v31 = vadd.f32 %v934_v12, %v472_v19  ;;  %v906_v39 = vld [vmem:[%s1492_s13 + $0x58] sm:$0xff]  ;;  %v937_v19 = vld [vmem:[%s1493_s14 + $0x1] ss:$0 sm:$0xff] }
 0x146   : > { %751 = vmatpush.msrb.mxu3 %v906_v39 }
 0x147   : > { %v388_v44 = vadd.f32 %v932_v40, %v384_v42  ;;  %v905_v40 = vld [vmem:[%s1492_s13 + $0x50] sm:$0xff] }
 0x148   : > { %752 = vmatpush.msrb.mxu3 %v905_v40 }
 0x149   : > { %v880_v46 = vmul.f32 -1.442695, %v388_v44 }
 0x14a   : > { %v425_v48 = vpop.f32.mrf.mxu3 }
 0x14b   : > { %950 = vpow2.f32 %v880_v46  ;;  %v428_v49 = vadd.f32 %v425_v48, %v306_v45  ;;  %v904_v45 = vld [vmem:[%s1492_s13 + $0x48] sm:$0xff]  ;;  %v903_v48 = vld [vmem:[%s1492_s13 + $0x40] sm:$0xff] }
 0x14c   : > { %753 = vmatpush.msrb.mxu3 %v904_v45 }
 0x14d   : > { %v432_v50 = vadd.f32 %v933_v47, %v428_v49 }
 0x14e   : > { %754 = vmatpush.msrb.mxu3 %v903_v48 }
 0x14f   : > { %v882_v51 = vmul.f32 -1.442695, %v432_v50 }
 0x151   : > { %v951_v52 = vpop.eup %950  ;;  %952 = vpow2.f32 %v882_v51 }
 0x152   : > { %v1299_v53 = vadd.f32 1.0, %v951_v52 }
 0x154   : > { %954 = vrcp.f32 %v1299_v53  ;;  %v404_v17 = vand.u32 2147483648, %v1299_v53  ;;  %v402_v22 = vand.u32 2147483647, %v1299_v53  ;;  %vm398_vm12 = vweird.f32 %v1299_v53 }
 0x156   : > { %v405_v35 = vor.u32 1.1754944e-38, %v404_v17  ;;  %vm403_vm14 = vcmp.eq.f32.partialorder %v402_v22, 8.507059e+37 }
 0x157   : > { %v953_v5 = vpop.eup %952 }
 0x158   : > { %v1341_v6 = vadd.f32 1.0, %v953_v5  ;;  %v547_v5 = vld [vmem:[%s1511_s29] sm:$0x3] }
 0x15a   : > { %v955_v7 = vpop.eup %954  ;;  %956 = vrcp.f32 %v1341_v6  ;;  %v448_v42 = vand.u32 2147483648, %v1341_v6  ;;  %v446_v44 = vand.u32 2147483647, %v1341_v6  ;;  %vm442_vm1 = vweird.f32 %v1341_v6 }
 0x15b   : > { %v394_v11 = vmul.f32 %v955_v7, %v1299_v53  ;;  %vm399_vm11 = vweird.f32 %v955_v7 }
 0x15c   : > { %vm400_vm13 = vmor %vm398_vm12, %vm399_vm11  ;;  %v449_v49 = vor.u32 1.1754944e-38, %v448_v42  ;;  %vm447_vm4 = vcmp.eq.f32.partialorder %v446_v44, 8.507059e+37 }
 0x15d   : > { %v395_v13 = vsub.f32 1.0, %v394_v11 }
 0x15f   : > { %v396_v21 = vmul.f32 %v955_v7, %v395_v13  ;;  %v891_v13 = vld [vmem:[%s1511_s29 + $0x2] sm:$0x3] }
 0x160   : > { %v957_v26 = vpop.eup %956 }
 0x161   : > { %v438_v29 = vmul.f32 %v957_v26, %v1341_v6  ;;  %v397_v30 = vadd.f32 %v955_v7, %v396_v21  ;;  %vm443_vm15 = vweird.f32 %v957_v26 }
 0x162   : > { %vm444_vm3 = vmor %vm442_vm1, %vm443_vm15 }
 0x163   : > { %v439_v36 = vsub.f32 1.0, %v438_v29  ;;  %v401_v37 = vsel %vm400_vm13, %v955_v7, %v397_v30 }
 0x164   : > { %v406_v38 = vsel %vm403_vm14, %v405_v35, %v401_v37 }
 0x165   : > { %v440_v41 = vmul.f32 %v957_v26, %v439_v36  ;;  %v475_v43 = vmul.f32 %v473_v31, %v406_v38  ;;  %v774_v31 = vld [vmem:[%s1496_s17 + $0x18] sm:$0xff]  ;;  %v772_v36 = vld [vmem:[%s1496_s17 + $0x8] sm:$0xff]  ;;  %v771_v38 = vld [vmem:[%s1496_s17] sm:$0xff] }
 0x166   : > { %794 = vmatpush.msra.mxu0 %v774_v31 }
 0x167   : > { %v441_v46 = vadd.f32 %v957_v26, %v440_v41  ;;  %v476_v47 = vadd.f32 %v475_v43, %v336_v18 }
 0x168   : > { %795 = vmatpush.msra.mxu0 %v773_v33 }
 0x169   : > { %v445_v50 = vsel %vm444_vm3, %v957_v26, %v441_v46  ;;  %958 = vtanh.f32 %v476_v47  ;;  %v938_v46 = vld [vmem:[%s1493_s14 + $0x2] ss:$0 sm:$0xff] }
 0x16a   : > { %v450_v51 = vsel %vm447_vm4, %v449_v49, %v445_v50  ;;  %796 = vmatpush.msra.mxu0 %v772_v36  ;;  %vm803_vm4 = vcmask 58368  }
 0x16b   : > { %v478_v52 = vsub.f32 1.0, %v450_v51  ;;  %v480_v55 = vmul.f32 %v450_v51, %v1234_v57  ;;  %v935_v57 = vld [vmem:[%s1495_s16] ss:$0 sm:$0xff] }
 0x16c   : > { %797 = vmatpush.msra.mxu0 %v771_v38 }
 0x16f   : > { %v959_v53 = vpop.eup %958 }
 0x170   : > { %v479_v54 = vmul.f32 %v959_v53, %v478_v52  ;;  %v897_v52 = vld [vmem:[%s1511_s29 + $0x4] sm:$0x3] }
 0x172   : > { %v481_v56 = vadd.f32 %v480_v55, %v479_v54 }
 0x174   : > { %v482_v59 = vmul.f32 %v481_v56, %v1271_v24 }
 0x176   : > { %v484_v60 = vadd.f32 %v483_v58, %v482_v59 }
 0x178   : > { %485 = vst.msk [vmem:[#allocation2 + $0x2] sm:$0x3] %vm66_vm0, %v484_v60  ;;  %v486_v62 = vmul.f32 %v484_v60, %v1271_v24 }
 0x17a   : > { %884 = vmatmul.msk.f32.vlgmr.msra.gmra.mxu1 %vm108_vm2, %v486_v62  ;;  %v542_v63 = vmul.f32 %v541_v61, %v486_v62 }
 0x17c   : > { %886 = vmatmul.msk.f32.vlgmr.msra.gmra.mxu2 %vm108_vm2, %v542_v63  ;;  %892 = vmatmul.msk.f32.vlgmr.msra.gmra.mxu3 %vm108_vm2, %v542_v63 }
 0x17d   : > { %898 = vmatmul.msk.f32.vlgmr.msrb.gmra.mxu0 %vm108_vm2, %v542_v63 }
 0x182   : > { %909 = vmatmul.msk.f32.vlgmr.msrb.gmra.mxu1 %vm108_vm2, %v1418_v0 }
 0x184   : > { %911 = vmatmul.msk.f32.vlgmr.msrb.gmra.mxu2 %vm108_vm2, %v1418_v0  ;;  %913 = vmatmul.msk.f32.vlgmr.msrb.gmra.mxu3 %vm108_vm2, %v1418_v0 }
 0x1f7   : > { %v515_v1 = vpop.f32.mrf.mxu1 }
 0x1f8   : > { %v516_v2 = vadd.f32 %v935_v57, %v515_v1 }
 0x1fa   : > { %v885_v4 = vmul.f32 -1.442695, %v516_v2  ;;  %v622_v53 = vpop.f32.mrf.mxu0 }
 0x1fb   : > { %v623_v61 = vadd.f32 %v897_v52, %v622_v53 }
 0x1fc   : > { %960 = vpow2.f32 %v885_v4 }
 0x1ff   : > { %v568_v6 = vpop.f32.mrf.mxu2  ;;  %v665_v8 = vpop.f32.mrf.mxu1 }
 0x200   : > { %v569_v7 = vadd.f32 %v568_v6, %v547_v5  ;;  %v595_v14 = vpop.f32.mrf.mxu3 }
 0x201   : > { %v596_v16 = vadd.f32 %v891_v13, %v595_v14  ;;  %v767_v14 = vmul.f32 %v1418_v0, %v1274_v32 }
 0x202   : > { %v961_v10 = vpop.eup %960  ;;  %v668_v11 = vadd.f32 %v665_v8, %v569_v7 }
 0x203   : > { %v521_v12 = vadd.f32 1.0, %v961_v10 }
 0x204   : > { %v672_v15 = vadd.f32 %v936_v9, %v668_v11 }
 0x205   : > { %962 = vrcp.f32 %v521_v12  ;;  %v533_v29 = vand.u32 2147483648, %v521_v12  ;;  %v531_v35 = vand.u32 2147483647, %v521_v12  ;;  %vm527_vm6 = vweird.f32 %v521_v12 }
 0x206   : > { %v910_v17 = vmul.f32 -1.442695, %v672_v15 }
 0x207   : > { %v709_v20 = vpop.f32.mrf.mxu2  ;;  %v534_v18 = vor.u32 1.1754944e-38, %v533_v29  ;;  %vm532_vm9 = vcmp.eq.f32.partialorder %v531_v35, 8.507059e+37 }
 0x208   : > { %964 = vpow2.f32 %v910_v17  ;;  %v712_v21 = vadd.f32 %v709_v20, %v596_v16  ;;  %v756_v48 = vpop.f32.mrf.mxu3 }
 0x209   : > { %v757_v56 = vadd.f32 %v938_v46, %v756_v48 }
 0x20a   : > { %v716_v22 = vadd.f32 %v937_v19, %v712_v21  ;;  %v939_v19 = vld [vmem:[%s1497_s18] ss:$0 sm:$0xff] }
 0x20b   : > { %v963_v23 = vpop.eup %962 }
 0x20c   : > { %v523_v25 = vmul.f32 %v963_v23, %v521_v12  ;;  %v912_v26 = vmul.f32 -1.442695, %v716_v22  ;;  %vm528_vm5 = vweird.f32 %v963_v23 }
 0x20d   : > { %vm529_vm7 = vmor %vm527_vm6, %vm528_vm5 }
 0x20e   : > { %v965_v27 = vpop.eup %964  ;;  %v524_v28 = vsub.f32 1.0, %v523_v25  ;;  %966 = vpow2.f32 %v912_v26 }
 0x20f   : > { %v676_v30 = vadd.f32 1.0, %v965_v27 }
 0x210   : > { %v525_v34 = vmul.f32 %v963_v23, %v524_v28 }
 0x211   : > { %968 = vrcp.f32 %v676_v30  ;;  %v688_v47 = vand.u32 2147483648, %v676_v30  ;;  %v686_v50 = vand.u32 2147483647, %v676_v30  ;;  %vm682_vm11 = vweird.f32 %v676_v30 }
 0x212   : > { %v526_v37 = vadd.f32 %v963_v23, %v525_v34 }
 0x213   : > { %v689_v58 = vor.u32 1.1754944e-38, %v688_v47  ;;  %vm687_vm13 = vcmp.eq.f32.partialorder %v686_v50, 8.507059e+37 }
 0x214   : > { %v967_v39 = vpop.eup %966  ;;  %v530_v40 = vsel %vm529_vm7, %v963_v23, %v526_v37 }
 0x215   : > { %v535_v41 = vsel %vm532_vm9, %v534_v18, %v530_v40  ;;  %v720_v42 = vadd.f32 1.0, %v967_v39 }
 0x216   : > { %539 = vst.msk [vmem:[%s537_s5] sm:$0x3] %vm538_vm8, %v535_v41 }
 0x217   : > { %v969_v43 = vpop.eup %968  ;;  %970 = vrcp.f32 %v720_v42  ;;  %v732_v57 = vand.u32 2147483648, %v720_v42  ;;  %v730_v2 = vand.u32 2147483647, %v720_v42  ;;  %vm726_vm15 = vweird.f32 %v720_v42 }
 0x218   : > { %v678_v44 = vmul.f32 %v969_v43, %v676_v30  ;;  %vm683_vm10 = vweird.f32 %v969_v43 }
 0x219   : > { %vm684_vm12 = vmor %vm682_vm11, %vm683_vm10  ;;  %v733_v6 = vor.u32 1.1754944e-38, %v732_v57  ;;  %vm731_vm3 = vcmp.eq.f32.partialorder %v730_v2, 8.507059e+37 }
 0x21a   : > { %v679_v45 = vsub.f32 1.0, %v678_v44 }
 0x21c   : > { %v680_v49 = vmul.f32 %v969_v43, %v679_v45 }
 0x21d   : > { %v971_v51 = vpop.eup %970 }
 0x21e   : > { %v722_v54 = vmul.f32 %v971_v51, %v720_v42  ;;  %v681_v55 = vadd.f32 %v969_v43, %v680_v49  ;;  %vm727_vm14 = vweird.f32 %v971_v51 }
 0x21f   : > { %vm728_vm1 = vmor %vm726_vm15, %vm727_vm14 }
 0x220   : > { %v723_v59 = vsub.f32 1.0, %v722_v54  ;;  %v685_v60 = vsel %vm684_vm12, %v969_v43, %v681_v55 }
 0x221   : > { %v690_v62 = vsel %vm687_vm13, %v689_v58, %v685_v60 }
 0x222   : > { %v724_v63 = vmul.f32 %v971_v51, %v723_v59  ;;  %v759_v1 = vmul.f32 %v757_v56, %v690_v62 }
 0x224   : > { %v725_v4 = vadd.f32 %v971_v51, %v724_v63  ;;  %v760_v5 = vadd.f32 %v759_v1, %v623_v61 }
 0x226   : > { %v729_v7 = vsel %vm728_vm1, %v971_v51, %v725_v4  ;;  %972 = vtanh.f32 %v760_v5 }
 0x227   : > { %v734_v8 = vsel %vm731_vm3, %v733_v6, %v729_v7 }
 0x228   : > { %v762_v9 = vsub.f32 1.0, %v734_v8  ;;  %v764_v12 = vmul.f32 %v734_v8, %v1418_v0 }
 0x22c   : > { %v973_v10 = vpop.eup %972 }
 0x22d   : > { %v763_v11 = vmul.f32 %v973_v10, %v762_v9 }
 0x22f   : > { %v765_v13 = vadd.f32 %v764_v12, %v763_v11 }
 0x231   : > { %v766_v15 = vmul.f32 %v765_v13, %v1271_v24 }
 0x233   : > { %v768_v16 = vadd.f32 %v767_v14, %v766_v15 }
 0x235   : > { %769 = vst.msk [vmem:[#allocation3] sm:$0x3] %vm66_vm0, %v768_v16  ;;  %v770_v17 = vmul.f32 %v768_v16, %v1271_v24 }
 0x237   : > { %914 = vmatmul.msk.f32.vlgmr.msra.gmra.mxu0 %vm108_vm2, %v770_v17 }
 0x2b3   :  { %76 = sbr.rel (!%p74_p0) target bundleno = 6 (0x6), region = 142 }
 0x2b4   : > { %v799_v20 = vpop.f32.mrf.mxu0 }
 0x2b5   : > { %v800_v32 = vadd.f32 %v939_v19, %v799_v20 }
 0x2b7   : > { %804 = vst.msk [vmem:[%s802_s6] sm:$0x3] %vm803_vm4, %v800_v32 }

</bundles_post_ra>
